<compile_context>
chip_gen: v7x
topology: tpu7x:2x2x1
jax: 0.10.0
libtpu: 0.0.40
codegen_flags: <defaults>
</compile_context>

<pallas_src>
import math
import functools

import jax
import jax.numpy as jnp
from jax.experimental import pallas as pl
from jax.experimental.pallas import tpu as pltpu


def _mlp_score_kernel(x_ref, w1_ref, b1_ref, w2_ref, score_ref, k2_ref, *, bt, n):
    # ---- fc1 + relu: one MXU matmul with M = Bt*N ---------------------------
    x = x_ref[...].astype(jnp.float32).reshape(bt * n, -1)          # (Bt*N, D)
    h = jnp.dot(x, w1_ref[...], preferred_element_type=jnp.float32)
    h = jnp.maximum(h + b1_ref[...], 0.0)                           # (Bt*N, H)

    # ---- per-step partial sum for k2 = mean(0.05 * sigmoid(h)) --------------
    # Reduced across steps (and divided by B*N*H) in the wrapper, so the batch
    # grid axis stays fully parallel.
    k2_ref[...] = jnp.sum(0.05 * jax.nn.sigmoid(h), keepdims=True)  # (1, 1)

    # ---- fc2 as VPU multiply + lane reduce (no MXU pass, no b2) -------------
    # w2_ref is the fc2 weight as a (1, H) broadcast row.  b2 is omitted:
    # softmax over tokens is invariant to a constant shift of the logits.
    weighted = h * w2_ref[...]                                      # (Bt*N, H)
    logits = jnp.sum(weighted.reshape(bt, n, -1), axis=-1)          # (Bt, N)

    # ---- softmax over the token axis (lane axis) ----------------------------
    m = jnp.max(logits, axis=-1, keepdims=True)
    e = jnp.exp(logits - m)
    p = e / jnp.sum(e, axis=-1, keepdims=True)                      # (Bt, N)
    score_ref[...] = p.astype(score_ref.dtype)


def _largest_divisor_leq(b, cap):
    best = 1
    for d in range(1, b + 1):
        if b % d == 0 and d <= cap:
            best = d
    return best


def mlp_score_forward(x, w1, b1, w2, b2=None):
    """x: (B, N, D) float32.  Returns (score (B, N), k2 scalar).

    b2 is accepted for API parity with the PyTorch module but is unused:
    softmax over the token axis is shift-invariant, so the fc2 bias cannot
    change `score`, and k2 is computed before fc2.
    """
    del b2
    B, N, D = x.shape
    H = w1.shape[1]
    assert w1.shape == (D, H)
    assert w2.shape == (H, 1)

    # ---- tile selection: several batches per grid step ----------------------
    # Budget the streamed (double-buffered) x tile to ~8 MiB so the whole
    # kernel fits comfortably inside a 32 MiB scoped-VMEM limit on every TPU
    # generation (v5e/v6e: 128 MiB physical, v7x: 64 MiB physical).
    x_bytes_per_batch = N * D * 4
    cap = max(1, (8 * 1024 * 1024) // (2 * x_bytes_per_batch))
    bt = _largest_divisor_leq(B, cap)
    g = B // bt

    b1_2d = b1.reshape(1, H)
    w2_row = w2.reshape(1, H)       # fc2 weight as a broadcast row (VPU path)

    kernel = functools.partial(_mlp_score_kernel, bt=bt, n=N)

    score_blk, k2_part = pl.pallas_call(
        kernel,
        out_shape=(
            jax.ShapeDtypeStruct((g, bt, N), jnp.float32),   # lane-dense score
            jax.ShapeDtypeStruct((g, 1, 1), jnp.float32),    # per-step k2 partials
        ),
        grid_spec=pltpu.PrefetchScalarGridSpec(
            num_scalar_prefetch=0,
            grid=(g,),
            in_specs=[
                pl.BlockSpec((bt, N, D), lambda i: (i, 0, 0)),   # x tile (streamed)
                pl.BlockSpec((D, H), lambda i: (0, 0)),          # w1 (resident)
                pl.BlockSpec((1, H), lambda i: (0, 0)),          # b1
                pl.BlockSpec((1, H), lambda i: (0, 0)),          # w2 row
            ],
            out_specs=[
                pl.BlockSpec((None, bt, N), lambda i: (i, 0, 0)),  # score block
                pl.BlockSpec((None, 1, 1), lambda i: (i, 0, 0)),   # k2 partial
            ],
        ),
        compiler_params=pltpu.CompilerParams(
            # No cross-step state anymore -> batch axis is fully parallel
            # (megacore-shardable on v7x, harmless on v5e/v6e).
            dimension_semantics=("parallel",),
            vmem_limit_bytes=32 * 1024 * 1024,
        ),
    )(x, w1, b1_2d, w2_row)

    score = score_blk.reshape(B, N)                  # free contiguous collapse
    k2 = jnp.sum(k2_part) / jnp.float32(B * N * H)   # finish the mean in f32
    return score, k2


def _reference(x, w1, b1, w2, b2):
    h = jnp.maximum(x @ w1 + b1, 0.0)
    k2 = jnp.mean(0.05 * jax.nn.sigmoid(h))
    logits = h @ w2 + b2                                  # (B, N, 1)
    score = jax.nn.softmax(logits, axis=1)[..., 0]        # softmax over dim=1
    return score, k2


if __name__ == "__main__":
    # Small shapes consistent with the module: input_dim=D, hidden_dim=D//2,
    # output_dim=1, input x of shape (batch, tokens, input_dim).
    B, N, D = 2, 8, 32
    H = D // 2

    key = jax.random.PRNGKey(0)
    kx, k1, k2_, k3, k4 = jax.random.split(key, 5)

    x = jax.random.normal(kx, (B, N, D), dtype=jnp.float32)

    # Deterministic init mimicking nn.Linear defaults (uniform +-1/sqrt(fan_in)).
    bound1 = 1.0 / math.sqrt(D)
    w1 = jax.random.uniform(k1, (D, H), jnp.float32, -bound1, bound1)
    b1 = jax.random.uniform(k2_, (H,), jnp.float32, -bound1, bound1)
    bound2 = 1.0 / math.sqrt(H)
    w2 = jax.random.uniform(k3, (H, 1), jnp.float32, -bound2, bound2)
    b2 = jax.random.uniform(k4, (1,), jnp.float32, -bound2, bound2)

    score, k2_val = mlp_score_forward(x, w1, b1, w2, b2)
    jax.block_until_ready((score, k2_val))

    score_ref, k2_ref = _reference(x, w1, b1, w2, b2)
    assert score.shape == (B, N)
    assert jnp.allclose(score, score_ref, atol=1e-5, rtol=1e-5)
    assert jnp.allclose(k2_val, k2_ref, atol=1e-6, rtol=1e-5)

    print("KERNEL_OK")
</pallas_src>

<mosaic_0001>
module attributes {stable_mosaic.version = 11 : i64} {
  func.func @_mlp_score_kernel(%arg0: i32, %arg1: memref<2x8x32xf32, #tpu.memory_space<vmem>>, %arg2: memref<32x16xf32, #tpu.memory_space<vmem>>, %arg3: memref<1x16xf32, #tpu.memory_space<vmem>>, %arg4: memref<1x16xf32, #tpu.memory_space<vmem>>, %arg5: memref<1x2x8xf32, #tpu.memory_space<vmem>>, %arg6: memref<1x1x1xf32, #tpu.memory_space<vmem>>) attributes {dimension_semantics = [#tpu.dimension_semantics<parallel>], iteration_bounds = array<i64: 1>, scalar_prefetch = 0 : i64, scratch_operands = 0 : i64, tpu.core_type = #tpu.core_type<tc>, window_params = [{transform_indices = @transform_0, window_bounds = array<i64: 2, 8, 32>}, {pipeline_mode = #tpu.pipeline_mode<synchronous>, transform_indices = @transform_1, window_bounds = array<i64: 32, 16>}, {pipeline_mode = #tpu.pipeline_mode<synchronous>, transform_indices = @transform_2, window_bounds = array<i64: 1, 16>}, {pipeline_mode = #tpu.pipeline_mode<synchronous>, transform_indices = @transform_3, window_bounds = array<i64: 1, 16>}, {transform_indices = @transform_4, window_bounds = array<i64: 1, 2, 8>}, {transform_indices = @transform_5, window_bounds = array<i64: 1, 1, 1>}]} {
    %c0 = arith.constant 0 : index
    %c0_0 = arith.constant 0 : index
    %c0_1 = arith.constant 0 : index
    %0 = vector.load %arg1[%c0, %c0_0, %c0_1] : memref<2x8x32xf32, #tpu.memory_space<vmem>>, vector<2x8x32xf32>
    %1 = vector.shape_cast %0 : vector<2x8x32xf32> to vector<16x32xf32>
    %c0_2 = arith.constant 0 : index
    %c0_3 = arith.constant 0 : index
    %2 = vector.load %arg2[%c0_2, %c0_3] : memref<32x16xf32, #tpu.memory_space<vmem>>, vector<32x16xf32>
    %cst = arith.constant dense<0.000000e+00> : vector<16x16xf32>
    %3 = tpu.matmul %1, %2, %cst {dimension_numbers = #tpu.dot_dimension_numbers<[1], [0], [0], [1], [0, 0, 1, 1], [], []>} : vector<16x32xf32>, vector<32x16xf32>, vector<16x16xf32> -> vector<16x16xf32>
    %c0_4 = arith.constant 0 : index
    %c0_5 = arith.constant 0 : index
    %4 = vector.load %arg3[%c0_4, %c0_5] : memref<1x16xf32, #tpu.memory_space<vmem>>, vector<1x16xf32>
    %5 = vector.broadcast %4 : vector<1x16xf32> to vector<16x16xf32>
    %6 = arith.addf %3, %5 : vector<16x16xf32>
    %cst_6 = arith.constant 0.000000e+00 : f32
    %7 = vector.broadcast %cst_6 : f32 to vector<16x16xf32>
    %8 = arith.maximumf %6, %7 : vector<16x16xf32>
    %9 = arith.negf %8 : vector<16x16xf32>
    %10 = math.exp %9 : vector<16x16xf32>
    %cst_7 = arith.constant 1.000000e+00 : f32
    %11 = vector.broadcast %cst_7 : f32 to vector<16x16xf32>
    %12 = arith.addf %11, %10 : vector<16x16xf32>
    %13 = arith.divf %11, %12 : vector<16x16xf32>
    %cst_8 = arith.constant 5.000000e-02 : f32
    %14 = vector.broadcast %cst_8 : f32 to vector<16x16xf32>
    %15 = arith.mulf %14, %13 : vector<16x16xf32>
    %16 = vector.shape_cast %15 : vector<16x16xf32> to vector<1x16x16xf32>
    %cst_9 = arith.constant dense<0.000000e+00> : vector<1xf32>
    %17 = vector.multi_reduction <add>, %16, %cst_9 [1, 2] : vector<1x16x16xf32> to vector<1xf32>
    %18 = vector.shape_cast %17 : vector<1xf32> to vector<1x1x1xf32>
    %19 = vector.extract %18[0, 0, 0] : f32 from vector<1x1x1xf32>
    %20 = vector.broadcast %19 : f32 to vector<1x1xf32>
    %c0_10 = arith.constant 0 : index
    %c0_11 = arith.constant 0 : index
    %c0_12 = arith.constant 0 : index
    %21 = vector.load %arg6[%c0_10, %c0_11, %c0_12] : memref<1x1x1xf32, #tpu.memory_space<vmem>>, vector<1x1x1xf32>
    %22 = vector.shape_cast %21 : vector<1x1x1xf32> to vector<1x1xf32>
    %23 = vector.shape_cast %20 : vector<1x1xf32> to vector<1x1x1xf32>
    tpu.vector_store %arg6[%c0_10, %c0_11, %c0_12], %23 {strides = array<i32>} : memref<1x1x1xf32, #tpu.memory_space<vmem>>, vector<1x1x1xf32>,
    %c0_13 = arith.constant 0 : index
    %c0_14 = arith.constant 0 : index
    %24 = vector.load %arg4[%c0_13, %c0_14] : memref<1x16xf32, #tpu.memory_space<vmem>>, vector<1x16xf32>
    %25 = vector.broadcast %24 : vector<1x16xf32> to vector<16x16xf32>
    %26 = arith.mulf %8, %25 : vector<16x16xf32>
    %27 = vector.shape_cast %26 : vector<16x16xf32> to vector<2x8x16xf32>
    %cst_15 = arith.constant dense<0.000000e+00> : vector<2x8xf32>
    %28 = vector.multi_reduction <add>, %27, %cst_15 [2] : vector<2x8x16xf32> to vector<2x8xf32>
    %cst_16 = arith.constant dense<0xFF800000> : vector<2xf32>
    %29 = vector.multi_reduction <maximumf>, %28, %cst_16 [1] : vector<2x8xf32> to vector<2xf32>
    %30 = vector.shape_cast %29 : vector<2xf32> to vector<2x1xf32>
    %31 = vector.broadcast %30 : vector<2x1xf32> to vector<2x8xf32>
    %32 = arith.subf %28, %31 : vector<2x8xf32>
    %33 = math.exp %32 : vector<2x8xf32>
    %cst_17 = arith.constant dense<0.000000e+00> : vector<2xf32>
    %34 = vector.multi_reduction <add>, %33, %cst_17 [1] : vector<2x8xf32> to vector<2xf32>
    %35 = vector.shape_cast %34 : vector<2xf32> to vector<2x1xf32>
    %36 = vector.broadcast %35 : vector<2x1xf32> to vector<2x8xf32>
    %37 = arith.divf %33, %36 : vector<2x8xf32>
    %c0_18 = arith.constant 0 : index
    %c0_19 = arith.constant 0 : index
    %c0_20 = arith.constant 0 : index
    %38 = vector.load %arg5[%c0_18, %c0_19, %c0_20] : memref<1x2x8xf32, #tpu.memory_space<vmem>>, vector<1x2x8xf32>
    %39 = vector.shape_cast %38 : vector<1x2x8xf32> to vector<2x8xf32>
    %40 = vector.shape_cast %37 : vector<2x8xf32> to vector<1x2x8xf32>
    tpu.vector_store %arg5[%c0_18, %c0_19, %c0_20], %40 {strides = array<i32>} : memref<1x2x8xf32, #tpu.memory_space<vmem>>, vector<1x2x8xf32>,
    return
  }
  func.func @transform_0(%arg0: i32) -> (i32, i32, i32) {
    %c0_i32 = arith.constant 0 : i32
    %c0_i32_0 = arith.constant 0 : i32
    %c0_i32_1 = arith.constant 0 : i32
    return %arg0, %c0_i32, %c0_i32_0 : i32, i32, i32
  }
  func.func @transform_1(%arg0: i32) -> (i32, i32) {
    %c0_i32 = arith.constant 0 : i32
    %c0_i32_0 = arith.constant 0 : i32
    %c0_i32_1 = arith.constant 0 : i32
    return %c0_i32, %c0_i32_0 : i32, i32
  }
  func.func @transform_2(%arg0: i32) -> (i32, i32) {
    %c0_i32 = arith.constant 0 : i32
    %c0_i32_0 = arith.constant 0 : i32
    %c0_i32_1 = arith.constant 0 : i32
    return %c0_i32, %c0_i32_0 : i32, i32
  }
  func.func @transform_3(%arg0: i32) -> (i32, i32) {
    %c0_i32 = arith.constant 0 : i32
    %c0_i32_0 = arith.constant 0 : i32
    %c0_i32_1 = arith.constant 0 : i32
    return %c0_i32, %c0_i32_0 : i32, i32
  }
  func.func @transform_4(%arg0: i32) -> (i32, i32, i32) {
    %c0_i32 = arith.constant 0 : i32
    %c0_i32_0 = arith.constant 0 : i32
    %c0_i32_1 = arith.constant 0 : i32
    return %arg0, %c0_i32, %c0_i32_0 : i32, i32, i32
  }
  func.func @transform_5(%arg0: i32) -> (i32, i32, i32) {
    %c0_i32 = arith.constant 0 : i32
    %c0_i32_0 = arith.constant 0 : i32
    %c0_i32_1 = arith.constant 0 : i32
    return %arg0, %c0_i32, %c0_i32_0 : i32, i32, i32
  }
}

</mosaic_0001>

<bundles_post_ra>
// kernel: tpu_custom_call.1
= control target key start
LH: loop header
LB: loop body
LE: loop exit
PB: predicated region body
PF: predicated region fallthrough
CT: control target
= control target key end

     0   :  { %11 = vsyncpa [#allocation3], 0  ;;  %vm34_vm0 = vcmask 261120   ;;  %s483_s0 = inlined_call_operand.vmem [shape: f32[2,8,32], index: 0, kind: input, shape index: {}]   ;;  %s484_s1 = inlined_call_operand.vmem [shape: f32[32,16], index: 1, kind: input, shape index: {}]   ;;  %s485_s2 = inlined_call_operand.vmem [shape: f32[1,16], index: 2, kind: input, shape index: {}]   ;;  %s486_s3 = inlined_call_operand.vmem [shape: f32[1,16], index: 3, kind: input, shape index: {}]   ;;  %s487_s4 = inlined_call_operand.hbm [shape: f32[1,2,8], index: 4, kind: output, shape index: {0}]   ;;  %s488_s5 = inlined_call_operand.hbm [shape: f32[1,1,1], index: 5, kind: output, shape index: {1}]  }
   0x1   :  { %v23_v0 = vld [vmem:[%s484_s1] sm:$0xff]  ;;  %v24_v1 = vld [vmem:[%s484_s1 + $0x8] sm:$0xff]  ;;  %v25_v2 = vld [vmem:[%s484_s1 + $0x10] sm:$0xff] }
   0x2   :  { %v305_v3 = vpack.c.bf16 %v24_v1, %v23_v0  ;;  %v26_v4 = vld [vmem:[%s484_s1 + $0x18] sm:$0xff]  ;;  %v21_v5 = vld [vmem:[%s483_s0] sm:$0xff] }
   0x3   :  { %v309_v6 = vpack.c.bf16 %v26_v4, %v25_v2  ;;  %302 = vmatprep.mubr.msk.f32.mxu0 %vm34_vm0, %v21_v5 }
   0x4   :  { %12 = vsyncpa [#allocation5], 0  ;;  %306 = vmatprep.subr.bf16.mxu0 %v305_v3  ;;  %v22_v7 = vld [vmem:[%s483_s0 + $0x8] sm:$0xff]  ;;  %v282_v8 = vld [vmem:[%s485_s2] ss:$0 sm:$0xff]  ;;  %vm132_vm1 = vcmask 130048   ;;  %v165_v33 = vlaneseq }
   0x5   :  { %308 = vmatpush3.bf16.msra.mxu0 %v305_v3  ;;  %v287_v14 = vld [vmem:[%s486_s3] ss:$0 sm:$0xff]  ;;  %vm175_vm2 = vcmask 1041409   ;;  %vm178_vm3 = vcmask 58368   ;;  %v384_v43 = vmov 0   ;;  %vm146_vm4 = vcmask 0  }
   0x6   :  { %310 = vmatprep.subr.bf16.mxu0 %v309_v6  ;;  %v166_v34 = vand.u32 127, %v165_v33  ;;  %v168_v35 = vshrl.u32 %v165_v33, 7  ;;  %319 = vset.pattern.permute.xlu0 %v384_v43  ;;  %s385_s2 = smov [#allocation4]  }
   0x7   :  { %318 = vset.pattern.permute.xlu1 %v384_v43  ;;  %s270_s3 = sshll.u32 %s385_s2, 4  ;;  %s271_s3 = int_to_ptr.vmem [resolvable:$true] %s270_s3 }
   0x8   :  { %v445_v37 = vsub.s32 %v166_v34, %v168_v35  ;;  %v185_v44 = vsub.s32 0, %v168_v35  ;;  %v189_v45 = vsub.s32 1, %v168_v35  ;;  %s336_s8 = scalar_lea.vmem %s271_s3, 16  ;;  %s340_s9 = scalar_lea.vmem %s271_s3, 32 }
   0x9   :  { %312 = vmatpush3.bf16.msra.mxu0 %v309_v6  ;;  %p337_p0 = scmp.ne.s32.totalorder %s271_s3, %s336_s8  ;;  %p341_p1 = scmp.lt.s32.totalorder %s271_s3, %s271_s3 }
   0xa   :  { %p342_p2 = scmp.lt.s32.totalorder %s340_s9, %s336_s8 }
   0xc   :  { %303 = vmatmul.mubr.msk.f32.vlgmr.msra.gmra.mrb[0].mxu0 %vm34_vm0, %v22_v7  ;;  %p343_p3 = por %p342_p2, %p341_p1 }
   0xe   :  { %p344_p4 = pnand %p343_p3, %p337_p0 }
  0xdf   :  { %v304_v9 = vpop.f32.mrb[0].mxu0 }
  0xe0   :  { %v113_v10 = vadd.f32 %v304_v9, %v282_v8  ;;  %v107_v11 = vpop.f32.mrb[1].mxu0 }
  0xe1   :  { %v108_v12 = vadd.f32 %v282_v8, %v107_v11 }
  0xe2   :  { %v117_v13 = vmax.f32 %v113_v10, 0.0 }
  0xe3   :  { %v116_v15 = vmax.f32 %v108_v12, 0.0 }
  0xe4   :  { %v286_v16 = vmul.f32 -1.442695, %v117_v13  ;;  %v156_v20 = vmul.f32 %v287_v14, %v117_v13 }
  0xe5   :  { %v285_v17 = vmul.f32 -1.442695, %v116_v15  ;;  %v155_v18 = vmul.f32 %v287_v14, %v116_v15 }
  0xe6   :  { %320 = vpow2.f32 %v286_v16  ;;  %v160_v21 = vsel %vm132_vm1, %v156_v20, 0.0 }
  0xe7   :  { %322 = vpow2.f32 %v285_v17  ;;  %v157_v19 = vsel %vm132_vm1, %v155_v18, 0.0 }
  0xe8   :  { %158 = vadd.xlane.f32.xlu0 %v157_v19 }
  0xec   :  { %161 = vadd.xlane.f32.xlu0 %v160_v21 }
  0xf0   :  { %v321_v22 = vpop.eup %320 }
  0xf1   :  { %v323_v23 = vpop.eup %322  ;;  %v125_v24 = vadd.f32 1.0, %v321_v22 }
  0xf2   :  { %v124_v25 = vadd.f32 1.0, %v323_v23 }
  0xf3   :  { %324 = vrcp.f32 %v125_v24 }
  0xf4   :  { %326 = vrcp.f32 %v124_v25 }
  0xfd   :  { %v325_v26 = vpop.eup %324 }
  0xfe   :  { %v327_v27 = vpop.eup %326  ;;  %v131_v28 = vmul.f32 0.05, %v325_v26 }
  0xff   :  { %v130_v29 = vmul.f32 0.05, %v327_v27 }
 0x100   :  { %v134_v30 = vsel %vm132_vm1, %v131_v28, 0.0 }
 0x101   :  { %v133_v31 = vsel %vm132_vm1, %v130_v29, 0.0 }
 0x102   :  { %v135_v32 = vadd.f32 %v134_v30, %v133_v31 }
 0x175   :  { %v159_v36 = vpop.xlane.xlu0 %158 }
 0x176   :  { %v170_v39 = vrot.slane %v159_v36, %v445_v37 }
 0x179   :  { %v162_v38 = vpop.xlane.xlu0 %161 }
 0x17a   :  { %v174_v40 = vrot.slane %v162_v38, %v445_v37 }
 0x17c   :  { %v176_v41 = vsel %vm175_vm2, %v174_v40, %v170_v39 }
 0x17d   :  { %v179_v42 = vsel %vm178_vm3, %v176_v41, -inf }
 0x17e   :  { %180 = vmax.xlane.f32.xlu1 %v179_v42 }
 0x20b   :  { %v181_v46 = vpop.xlane.xlu1 %180 }
 0x20c   :  { %v186_v47 = vrot.slane %v181_v46, %v185_v44  ;;  %v190_v48 = vrot.slane %v181_v46, %v189_v45 }
 0x20e   :  { %v193_v49 = vsub.f32 %v159_v36, %v186_v47  ;;  %v194_v50 = vsub.f32 %v162_v38, %v190_v48 }
 0x210   :  { %v195_v51 = vmul.f32 1.442695, %v193_v49  ;;  %v197_v52 = vmul.f32 1.442695, %v194_v50 }
 0x212   :  { %328 = vpow2.f32 %v195_v51 }
 0x213   :  { %330 = vpow2.f32 %v197_v52 }
 0x21c   :  { %v329_v53 = vpop.eup %328 }
 0x21d   :  { %v331_v54 = vpop.eup %330  ;;  %202 = vperm.xlu1 %318, %v329_v53  }
 0x21e   :  { %205 = vperm.xlu0 %319, %v331_v54  }
 0x23d   :  { %136 = vadd.xlane.f32.xlu0 %v135_v32 }
 0x29c   :  { %v203_v55 = vpop.permute.xlu1 %202 }
 0x29d   :  { %v206_v56 = vpop.permute.xlu0 %205  ;;  %v210_v57 = vrot.slane %v203_v55, %v445_v37 }
 0x29e   :  { %v214_v58 = vrot.slane %v206_v56, %v445_v37 }
 0x2a0   :  { %v215_v59 = vsel %vm175_vm2, %v214_v58, %v210_v57 }
 0x2a1   :  { %v217_v60 = vsel %vm178_vm3, %v215_v59, 0.0 }
 0x2a2   :  { %218 = vadd.xlane.f32.xlu1 %v217_v60 }
 0x2ca   :  { %v137_v61 = vpop.xlane.xlu0 %136 }
 0x2cb   :  { %v138_v62 = vrot.slane %v137_v61, 4 }
 0x2cd   :  { %v139_v63 = vadd.f32 %v138_v62, %v137_v61 }
 0x2cf   :  { %v140_v0 = vrot.slane %v139_v63, 2 }
 0x2d1   :  { %v141_v1 = vadd.f32 %v140_v0, %v139_v63 }
 0x2d3   :  { %v142_v2 = vrot.slane %v141_v1, 1 }
 0x2d5   :  { %v143_v3 = vadd.f32 %v142_v2, %v141_v1 }
 0x2d7   :  { %313 = vpush %v143_v3 }
 0x308   :  { %s314_s0 = spop %313 }
 0x309   :  { %v145_v4 = vstv %s314_s0 }
 0x30a   :  { %147 = vst.msk [vmem:[#allocation4] sm:$0x1] %vm146_vm4, %v145_v4 }
 0x32f   :  { %v219_v5 = vpop.xlane.xlu1 %218 }
 0x330   :  { %v224_v6 = vrot.slane %v219_v5, %v185_v44  ;;  %v228_v7 = vrot.slane %v219_v5, %v189_v45 }
 0x332   :  { %332 = vrcp.f32 %v224_v6 }
 0x333   :  { %334 = vrcp.f32 %v228_v7 }
 0x33c   :  { %v333_v8 = vpop.eup %332 }
 0x33d   :  { %v232_v9 = vmul.f32 %v333_v8, %v329_v53  ;;  %v335_v10 = vpop.eup %334 }
 0x33e   :  { %v234_v11 = vmul.f32 %v335_v10, %v331_v54 }
 0x33f   :  { %238 = vperm.xlu1 %318, %v232_v9  }
 0x343   :  { %241 = vperm.xlu1 %318, %v234_v11  }
 0x344   :  { %347 = shalt.err (!%p344_p4)
}
 0x345   :  { %s348_s12 = scalar_lea.hbm %s488_s5, 16 }
 0x346   :  { %p349_p5 = scmp.ne.s32.totalorder %s488_s5, %s348_s12  ;;  %p352_p6 = scmp.lt.u32.totalorder %s348_s12, %s488_s5 }
 0x348   :  { %p354_p7 = pnand %p352_p6, %p349_p5 }
 0x34a   :  { %357 = shalt.err (!%p354_p7)
}
 0x34b   :  { %273 = dma.vmem_to_hbm [thread:$0]  %s271_s3, 16, %s488_s5, [#allocation5]  }
 0x34c   :  { %s386_s19 = smov [#allocation2]  }
 0x34d   :  { %s260_s20 = sshll.u32 %s386_s19, 4  ;;  %s261_s20 = int_to_ptr.vmem [resolvable:$true] %s260_s20 }
 0x34e   :  { %s358_s21 = scalar_lea.vmem %s261_s20, 32  ;;  %p363_p9 = scmp.lt.s32.totalorder %s261_s20, %s261_s20 }
 0x34f   :  { %p359_p8 = scmp.ne.s32.totalorder %s261_s20, %s358_s21  ;;  %p364_p10 = scmp.lt.s32.totalorder %s358_s21, %s358_s21 }
 0x351   :  { %p365_p11 = por %p364_p10, %p363_p9 }
 0x353   :  { %p366_p12 = pnand %p365_p11, %p359_p8 }
 0x3be   :  { %v239_v12 = vpop.permute.xlu1 %238 }
 0x3bf   :  { %v246_v14 = vrot.slane %v239_v12, %v445_v37 }
 0x3c2   :  { %v242_v13 = vpop.permute.xlu1 %241 }
 0x3c3   :  { %v250_v15 = vrot.slane %v242_v13, %v445_v37 }
 0x3c5   :  { %v251_v16 = vsel %vm175_vm2, %v250_v15, %v246_v14 }
 0x3c6   :  { %253 = vst.msk [vmem:[#allocation2] sm:$0x3] %vm178_vm3, %v251_v16 }
 0x3c7   :  { %369 = shalt.err (!%p366_p12)
}
 0x3c8   :  { %s370_s23 = scalar_lea.hbm %s487_s4, 32 }
 0x3c9   :  { %p371_p13 = scmp.ne.s32.totalorder %s487_s4, %s370_s23  ;;  %p374_p0 = scmp.lt.u32.totalorder %s370_s23, %s487_s4 }
 0x3cb   :  { %p376_p1 = pnand %p374_p0, %p371_p13 }
 0x3cd   :  { %379 = shalt.err (!%p376_p1)
}
 0x3ce   :  { %263 = dma.vmem_to_hbm [thread:$0]  %s261_s20, 32, %s487_s4, [#allocation3]  }
 0x3cf   :  { %380 = dma.done.wait [#allocation3], 32  }
 0x3d0   :  { %381 = vsyncadd [#allocation3], 4294967264 }
 0x3d1   :  { %382 = dma.done.wait [#allocation5], 16  }
 0x3d2   :  { %383 = vsyncadd [#allocation5], 4294967280 }
 0x3d3   :  { %280 = vsyncpa [#allocation3], 1 }
 0x3d4   :  { %281 = vsyncpa [#allocation5], 1 }

</bundles_post_ra>
